<compile_context>
chip_gen: v7x
topology: tpu7x:2x2x1
jax: 0.10.0
libtpu: 0.0.40
codegen_flags: <defaults>
</compile_context>

<pallas_src>
import functools

import jax
import jax.numpy as jnp
from jax import lax
from jax.experimental import pallas as pl
from jax.experimental.pallas import tpu as pltpu


def _round_up(x, m):
    return (x + m - 1) // m * m


def _pick_conv_row_tile(H, W):
    """Largest divisor of H giving a moderate matmul M dim (tH*W <= 2048),
    preferring >= 2 tiles along H (pipelining / v7x core split) and a
    sublane-aligned M dim ((tH*W) % 8 == 0)."""
    cands = [t for t in range(1, H + 1)
             if H % t == 0 and t * W <= 2048 and (H // t >= 2 or H == 1)]
    if not cands:
        return 1
    aligned = [t for t in cands if (t * W) % 8 == 0]
    return max(aligned) if aligned else max(cands)


def _pick_bn_row_tile(H, W, Cp, budget_bytes=8 * 1024 * 1024):
    """BN-apply is mem-bound: biggest divisor-of-H row tile whose
    (bf16 in + f32 out) block fits the byte budget."""
    best = 1
    for t in range(1, H + 1):
        if H % t == 0 and t * W * Cp * 6 <= budget_bytes:
            best = t
    return best


def _conv3x3_stats_kernel(xs_ref, w_ref, y_ref, sum_ref, ssq_ref, *, tH, W, K, Cp):
    """One (n, h_outer, h_inner) step: 3x3 conv as a single deep MXU matmul
    plus fused training-mode BatchNorm statistics.

    xs_ref : (1, tH, W, 9*Cin) bf16  all-tap-folded input tile
    w_ref  : (9*Cin, Cp)       bf16  repacked weights (resident, tiny)
    y_ref  : (1, tH, W, Cp)    bf16  conv output tile (lane-dense channels)
    sum_ref/ssq_ref : (1, 1, 1, Cp) f32 per-(n, h_outer) partial sum / sum-sq
    """
    hi = pl.program_id(2)

    @pl.when(hi == 0)
    def _init():
        sum_ref[...] = jnp.zeros_like(sum_ref)
        ssq_ref[...] = jnp.zeros_like(ssq_ref)

    lhs = xs_ref[...].reshape(tH * W, K)                       # bf16
    acc = jnp.dot(lhs, w_ref[...], preferred_element_type=jnp.float32)

    y_ref[...] = acc.reshape(1, tH, W, Cp).astype(y_ref.dtype)

    # Fused training-mode BatchNorm statistics (f32 accumulation).
    # TODO(synk): one-pass E[x^2]-E[x]^2 can cancel when |mean| >> std; use a
    # shifted / two-pass formulation for production-scale inputs.
    sum_ref[...] += jnp.sum(acc, axis=0).reshape(1, 1, 1, Cp)
    ssq_ref[...] += jnp.sum(acc * acc, axis=0).reshape(1, 1, 1, Cp)


def _bn_apply_relu_kernel(y_ref, scale_ref, shift_ref, o_ref):
    """Apply the folded BN (y*scale + shift) followed by ReLU on one block."""
    Cp = y_ref.shape[-1]
    scale = scale_ref[...].reshape(1, 1, 1, Cp)
    shift = shift_ref[...].reshape(1, 1, 1, Cp)
    y = y_ref[...].astype(jnp.float32)
    o_ref[...] = jnp.maximum(y * scale + shift, 0.0).astype(o_ref.dtype)


def conv2d_bn_relu(x_nchw, weight, gamma, beta, eps=1e-5):
    """x_nchw: (N, Cin, H, W); weight: (Cout, Cin, 3, 3); gamma/beta: (Cout,)."""
    N, Cin, H, W = x_nchw.shape
    Cout = weight.shape[0]
    Cp = _round_up(Cout, 128)          # lane-dense output-channel tile
    K = 9 * Cin                        # full contraction depth (kh*kw*Cin)
    tH = _pick_conv_row_tile(H, W)
    n_ht = H // tH
    n_ho = 2 if (n_ht % 2 == 0 and n_ht >= 2) else 1   # v7x megacore H split
    n_hi = n_ht // n_ho

    # ---- glue (plain JAX, small tensors only) -------------------------------
    # Fold all 9 (kh, kw) taps into the channel axis once, so the kernel does a
    # single deep K=9*Cin matmul per tile and needs no halo residency.
    # TODO(synk): for large Cin (9*Cin >> MXU depth) keep kw-only folding and
    # form the kh taps in-kernel from a halo tile to avoid the 9x input bytes.
    x_nhwc = jnp.transpose(x_nchw, (0, 2, 3, 1))                     # (N,H,W,Cin)
    xp = jnp.pad(x_nhwc, ((0, 0), (1, 1), (1, 1), (0, 0))).astype(jnp.bfloat16)
    xs9 = jnp.concatenate(
        [xp[:, kh:kh + H, kw:kw + W, :] for kh in range(3) for kw in range(3)],
        axis=-1)                                                     # (N,H,W,9*Cin)
    # Weights: (Cout, Cin, 3, 3) -> (9*Cin, Cp), index [(kh*3+kw)*Cin+ci, co].
    w9 = jnp.transpose(weight, (2, 3, 1, 0)).reshape(K, Cout)
    w9 = jnp.pad(w9, ((0, 0), (0, Cp - Cout))).astype(jnp.bfloat16)

    cost1 = pl.CostEstimate(
        flops=2 * N * H * W * K * Cp + 3 * N * H * W * Cp,
        transcendentals=0,
        bytes_accessed=(xs9.size * 2 + w9.size * 2
                        + N * H * W * Cp * 2 + 2 * N * n_ho * Cp * 4))

    # ---- kernel 1: conv (one deep MXU matmul / tile) + fused BN stats -------
    y, sums, ssqs = pl.pallas_call(
        functools.partial(_conv3x3_stats_kernel, tH=tH, W=W, K=K, Cp=Cp),
        out_shape=(
            jax.ShapeDtypeStruct((N, H, W, Cp), jnp.bfloat16),
            jax.ShapeDtypeStruct((N, n_ho, 1, Cp), jnp.float32),
            jax.ShapeDtypeStruct((N, n_ho, 1, Cp), jnp.float32),
        ),
        grid_spec=pltpu.PrefetchScalarGridSpec(
            num_scalar_prefetch=0,
            grid=(N, n_ho, n_hi),
            in_specs=[
                pl.BlockSpec((1, tH, W, K),
                             lambda n, ho, hi: (n, ho * n_hi + hi, 0, 0)),
                # Constant block index -> fetched once, tiny resident slab.
                pl.BlockSpec((K, Cp), lambda n, ho, hi: (0, 0)),
            ],
            out_specs=[
                pl.BlockSpec((1, tH, W, Cp),
                             lambda n, ho, hi: (n, ho * n_hi + hi, 0, 0)),
                pl.BlockSpec((1, 1, 1, Cp), lambda n, ho, hi: (n, ho, 0, 0)),
                pl.BlockSpec((1, 1, 1, Cp), lambda n, ho, hi: (n, ho, 0, 0)),
            ],
        ),
        compiler_params=pltpu.CompilerParams(
            dimension_semantics=("parallel", "parallel", "arbitrary"),
            vmem_limit_bytes=48 * 1024 * 1024),
        cost_estimate=cost1,
    )(xs9, w9)

    # ---- tiny per-channel finalisation (Cp-sized, negligible) ---------------
    cnt = float(N * H * W)
    mean = jnp.sum(sums, axis=(0, 1, 2)) / cnt                         # (Cp,)
    var = jnp.maximum(jnp.sum(ssqs, axis=(0, 1, 2)) / cnt - mean * mean, 0.0)
    inv = lax.rsqrt(var + eps)
    gamma_p = jnp.pad(gamma.astype(jnp.float32), (0, Cp - Cout))
    beta_p = jnp.pad(beta.astype(jnp.float32), (0, Cp - Cout))
    scale = (gamma_p * inv).reshape(1, Cp)
    shift = (beta_p - mean * gamma_p * inv).reshape(1, Cp)

    # ---- kernel 2: BN-apply + ReLU, big mem-bound blocks --------------------
    tH2 = _pick_bn_row_tile(H, W, Cp)
    n_ht2 = H // tH2
    out_padded = pl.pallas_call(
        _bn_apply_relu_kernel,
        out_shape=jax.ShapeDtypeStruct((N, H, W, Cp), jnp.float32),
        grid_spec=pltpu.PrefetchScalarGridSpec(
            num_scalar_prefetch=0,
            grid=(N, n_ht2),
            in_specs=[
                pl.BlockSpec((1, tH2, W, Cp), lambda n, h: (n, h, 0, 0)),
                pl.BlockSpec((1, Cp), lambda n, h: (0, 0)),
                pl.BlockSpec((1, Cp), lambda n, h: (0, 0)),
            ],
            out_specs=pl.BlockSpec((1, tH2, W, Cp), lambda n, h: (n, h, 0, 0)),
        ),
        compiler_params=pltpu.CompilerParams(
            dimension_semantics=("parallel", "parallel"),
            vmem_limit_bytes=48 * 1024 * 1024),
    )(y, scale, shift)

    # TODO(synk): when Cout << 128, store y/out in a transposed (N, Cout, H*W)
    # layout (lane-dense spatial, no channel padding) to cut intermediate and
    # output HBM bytes by Cp/Cout and make the NCHW conversion a free reshape.
    return jnp.transpose(out_padded[:, :, :, :Cout], (0, 3, 1, 2))


def _reference(x_nchw, weight, gamma, beta, eps=1e-5):
    # pure-JAX reference (conv + training-mode BN + ReLU) for sanity check
    y = lax.conv_general_dilated(
        x_nchw, weight, window_strides=(1, 1), padding=((1, 1), (1, 1)),
        dimension_numbers=("NCHW", "OIHW", "NCHW"))
    mean = jnp.mean(y, axis=(0, 2, 3), keepdims=True)
    var = jnp.mean(jnp.square(y - mean), axis=(0, 2, 3), keepdims=True)
    yhat = (y - mean) / jnp.sqrt(var + eps)
    out = yhat * gamma.reshape(1, -1, 1, 1) + beta.reshape(1, -1, 1, 1)
    return jnp.maximum(out, 0.0)


if __name__ == "__main__":
    key = jax.random.PRNGKey(0)
    N, Cin, H, W = 2, 4, 16, 16
    Cout = 8

    kx, kw = jax.random.split(key)
    x = jax.random.normal(kx, (N, Cin, H, W), dtype=jnp.float32)
    # deterministic conv weight (kaiming-uniform-like range), bias=False
    bound = 1.0 / jnp.sqrt(Cin * 3 * 3)
    weight = jax.random.uniform(kw, (Cout, Cin, 3, 3), jnp.float32,
                                minval=-bound, maxval=bound)
    gamma = jnp.ones((Cout,), jnp.float32)   # BatchNorm2d default weight
    beta = jnp.zeros((Cout,), jnp.float32)   # BatchNorm2d default bias

    out = jax.block_until_ready(conv2d_bn_relu(x, weight, gamma, beta))

    ref = _reference(x, weight, gamma, beta)
    assert out.shape == (N, Cout, H, W)
    # tolerance loosened vs the pure-f32 version: MXU operands and the conv
    # intermediate are bf16 (stats / accumulation stay f32).
    assert jnp.allclose(out, ref, atol=5e-2, rtol=5e-2), "mismatch vs reference"
    print("KERNEL_OK")
</pallas_src>

<mosaic_0001>
module attributes {stable_mosaic.version = 11 : i64} {
  func.func @_conv3x3_stats_kernel(%arg0: i32, %arg1: i32, %arg2: i32, %arg3: memref<1x8x16x36xbf16, #tpu.memory_space<vmem>>, %arg4: memref<36x128xbf16, #tpu.memory_space<vmem>>, %arg5: memref<1x8x16x128xbf16, #tpu.memory_space<vmem>>, %arg6: memref<1x1x1x128xf32, #tpu.memory_space<vmem>>, %arg7: memref<1x1x1x128xf32, #tpu.memory_space<vmem>>) attributes {dimension_semantics = [#tpu.dimension_semantics<parallel>, #tpu.dimension_semantics<parallel>, #tpu.dimension_semantics<arbitrary>], iteration_bounds = array<i64: 2, 2, 1>, scalar_prefetch = 0 : i64, scratch_operands = 0 : i64, tpu.core_type = #tpu.core_type<tc>, window_params = [{transform_indices = @transform_0, window_bounds = array<i64: 1, 8, 16, 36>}, {pipeline_mode = #tpu.pipeline_mode<synchronous>, transform_indices = @transform_1, window_bounds = array<i64: 36, 128>}, {transform_indices = @transform_2, window_bounds = array<i64: 1, 8, 16, 128>}, {transform_indices = @transform_3, window_bounds = array<i64: 1, 1, 1, 128>}, {transform_indices = @transform_4, window_bounds = array<i64: 1, 1, 1, 128>}]} {
    %c0_i32 = arith.constant 0 : i32
    %0 = arith.cmpi eq, %arg2, %c0_i32 : i32
    %1 = arith.extui %0 : i1 to i32
    %c0_i32_0 = arith.constant 0 : i32
    %2 = arith.cmpi ne, %1, %c0_i32_0 : i32
    scf.if %2 {
      %cst_28 = arith.constant 0.000000e+00 : f32
      %21 = vector.broadcast %cst_28 : f32 to vector<1x1x1x128xf32>
      %c0_29 = arith.constant 0 : index
      %c0_30 = arith.constant 0 : index
      %c0_31 = arith.constant 0 : index
      %c0_32 = arith.constant 0 : index
      %22 = vector.load %arg6[%c0_29, %c0_30, %c0_31, %c0_32] : memref<1x1x1x128xf32, #tpu.memory_space<vmem>>, vector<1x1x1x128xf32>
      tpu.vector_store %arg6[%c0_29, %c0_30, %c0_31, %c0_32], %21 {strides = array<i32>} : memref<1x1x1x128xf32, #tpu.memory_space<vmem>>, vector<1x1x1x128xf32>,
      %cst_33 = arith.constant 0.000000e+00 : f32
      %23 = vector.broadcast %cst_33 : f32 to vector<1x1x1x128xf32>
      %c0_34 = arith.constant 0 : index
      %c0_35 = arith.constant 0 : index
      %c0_36 = arith.constant 0 : index
      %c0_37 = arith.constant 0 : index
      %24 = vector.load %arg7[%c0_34, %c0_35, %c0_36, %c0_37] : memref<1x1x1x128xf32, #tpu.memory_space<vmem>>, vector<1x1x1x128xf32>
      tpu.vector_store %arg7[%c0_34, %c0_35, %c0_36, %c0_37], %23 {strides = array<i32>} : memref<1x1x1x128xf32, #tpu.memory_space<vmem>>, vector<1x1x1x128xf32>,
    } else {
    }
    %c0 = arith.constant 0 : index
    %c0_1 = arith.constant 0 : index
    %c0_2 = arith.constant 0 : index
    %c0_3 = arith.constant 0 : index
    %3 = vector.load %arg3[%c0, %c0_1, %c0_2, %c0_3] : memref<1x8x16x36xbf16, #tpu.memory_space<vmem>>, vector<1x8x16x36xbf16>
    %4 = vector.shape_cast %3 : vector<1x8x16x36xbf16> to vector<128x36xbf16>
    %c0_4 = arith.constant 0 : index
    %c0_5 = arith.constant 0 : index
    %5 = vector.load %arg4[%c0_4, %c0_5] : memref<36x128xbf16, #tpu.memory_space<vmem>>, vector<36x128xbf16>
    %cst = arith.constant dense<0.000000e+00> : vector<128x128xf32>
    %6 = tpu.matmul %4, %5, %cst {dimension_numbers = #tpu.dot_dimension_numbers<[1], [0], [0], [1], [0, 0, 1, 1], [], []>} : vector<128x36xbf16>, vector<36x128xbf16>, vector<128x128xf32> -> vector<128x128xf32>
    %7 = vector.shape_cast %6 : vector<128x128xf32> to vector<1x8x16x128xf32>
    %8 = arith.truncf %7 : vector<1x8x16x128xf32> to vector<1x8x16x128xbf16>
    %c0_6 = arith.constant 0 : index
    %c0_7 = arith.constant 0 : index
    %c0_8 = arith.constant 0 : index
    %c0_9 = arith.constant 0 : index
    %9 = vector.load %arg5[%c0_6, %c0_7, %c0_8, %c0_9] : memref<1x8x16x128xbf16, #tpu.memory_space<vmem>>, vector<1x8x16x128xbf16>
    tpu.vector_store %arg5[%c0_6, %c0_7, %c0_8, %c0_9], %8 {strides = array<i32>} : memref<1x8x16x128xbf16, #tpu.memory_space<vmem>>, vector<1x8x16x128xbf16>,
    %c0_10 = arith.constant 0 : index
    %c0_11 = arith.constant 0 : index
    %c0_12 = arith.constant 0 : index
    %c0_13 = arith.constant 0 : index
    %10 = vector.load %arg6[%c0_10, %c0_11, %c0_12, %c0_13] : memref<1x1x1x128xf32, #tpu.memory_space<vmem>>, vector<1x1x1x128xf32>
    %cst_14 = arith.constant dense<0.000000e+00> : vector<128xf32>
    %11 = vector.multi_reduction <add>, %6, %cst_14 [0] : vector<128x128xf32> to vector<128xf32>
    %12 = vector.shape_cast %11 : vector<128xf32> to vector<1x1x1x128xf32>
    %13 = arith.addf %10, %12 : vector<1x1x1x128xf32>
    %c0_15 = arith.constant 0 : index
    %c0_16 = arith.constant 0 : index
    %c0_17 = arith.constant 0 : index
    %c0_18 = arith.constant 0 : index
    %14 = vector.load %arg6[%c0_15, %c0_16, %c0_17, %c0_18] : memref<1x1x1x128xf32, #tpu.memory_space<vmem>>, vector<1x1x1x128xf32>
    tpu.vector_store %arg6[%c0_15, %c0_16, %c0_17, %c0_18], %13 {strides = array<i32>} : memref<1x1x1x128xf32, #tpu.memory_space<vmem>>, vector<1x1x1x128xf32>,
    %c0_19 = arith.constant 0 : index
    %c0_20 = arith.constant 0 : index
    %c0_21 = arith.constant 0 : index
    %c0_22 = arith.constant 0 : index
    %15 = vector.load %arg7[%c0_19, %c0_20, %c0_21, %c0_22] : memref<1x1x1x128xf32, #tpu.memory_space<vmem>>, vector<1x1x1x128xf32>
    %16 = arith.mulf %6, %6 : vector<128x128xf32>
    %cst_23 = arith.constant dense<0.000000e+00> : vector<128xf32>
    %17 = vector.multi_reduction <add>, %16, %cst_23 [0] : vector<128x128xf32> to vector<128xf32>
    %18 = vector.shape_cast %17 : vector<128xf32> to vector<1x1x1x128xf32>
    %19 = arith.addf %15, %18 : vector<1x1x1x128xf32>
    %c0_24 = arith.constant 0 : index
    %c0_25 = arith.constant 0 : index
    %c0_26 = arith.constant 0 : index
    %c0_27 = arith.constant 0 : index
    %20 = vector.load %arg7[%c0_24, %c0_25, %c0_26, %c0_27] : memref<1x1x1x128xf32, #tpu.memory_space<vmem>>, vector<1x1x1x128xf32>
    tpu.vector_store %arg7[%c0_24, %c0_25, %c0_26, %c0_27], %19 {strides = array<i32>} : memref<1x1x1x128xf32, #tpu.memory_space<vmem>>, vector<1x1x1x128xf32>,
    return
  }
  func.func @transform_0(%arg0: i32, %arg1: i32, %arg2: i32) -> (i32, i32, i32, i32) {
    %c1_i32 = arith.constant 1 : i32
    %0 = arith.muli %arg1, %c1_i32 : i32
    %1 = arith.addi %0, %arg2 : i32
    %c0_i32 = arith.constant 0 : i32
    %c0_i32_0 = arith.constant 0 : i32
    %c0_i32_1 = arith.constant 0 : i32
    return %arg0, %1, %c0_i32, %c0_i32_0 : i32, i32, i32, i32
  }
  func.func @transform_1(%arg0: i32, %arg1: i32, %arg2: i32) -> (i32, i32) {
    %c0_i32 = arith.constant 0 : i32
    %c0_i32_0 = arith.constant 0 : i32
    %c0_i32_1 = arith.constant 0 : i32
    return %c0_i32, %c0_i32_0 : i32, i32
  }
  func.func @transform_2(%arg0: i32, %arg1: i32, %arg2: i32) -> (i32, i32, i32, i32) {
    %c1_i32 = arith.constant 1 : i32
    %0 = arith.muli %arg1, %c1_i32 : i32
    %1 = arith.addi %0, %arg2 : i32
    %c0_i32 = arith.constant 0 : i32
    %c0_i32_0 = arith.constant 0 : i32
    %c0_i32_1 = arith.constant 0 : i32
    return %arg0, %1, %c0_i32, %c0_i32_0 : i32, i32, i32, i32
  }
  func.func @transform_3(%arg0: i32, %arg1: i32, %arg2: i32) -> (i32, i32, i32, i32) {
    %c0_i32 = arith.constant 0 : i32
    %c0_i32_0 = arith.constant 0 : i32
    %c0_i32_1 = arith.constant 0 : i32
    return %arg0, %arg1, %c0_i32, %c0_i32_0 : i32, i32, i32, i32
  }
  func.func @transform_4(%arg0: i32, %arg1: i32, %arg2: i32) -> (i32, i32, i32, i32) {
    %c0_i32 = arith.constant 0 : i32
    %c0_i32_0 = arith.constant 0 : i32
    %c0_i32_1 = arith.constant 0 : i32
    return %arg0, %arg1, %c0_i32, %c0_i32_0 : i32, i32, i32, i32
  }
}

</mosaic_0001>

<bundles_post_ra>
// kernel: tpu_custom_call.1
= control target key start
LH: loop header
LB: loop body
LE: loop exit
PB: predicated region body
PF: predicated region fallthrough
CT: control target
= control target key end

     0   :  { %s1802_s0 = inlined_call_operand.hbm [shape: bf16[2,16,16,36], index: 0, kind: input, shape index: {}]   ;;  %s1803_s1 = inlined_call_operand.hbm [shape: bf16[36,128], index: 1, kind: input, shape index: {}]   ;;  %s1804_s2 = inlined_call_operand.hbm [shape: bf16[2,16,16,128], index: 2, kind: output, shape index: {0}]   ;;  %s1805_s3 = inlined_call_operand.hbm [shape: f32[2,2,1,128], index: 3, kind: output, shape index: {1}]   ;;  %s1806_s4 = inlined_call_operand.hbm [shape: f32[2,2,1,128], index: 4, kind: output, shape index: {2}]  }
   0x1   :  { %1818 = sst [smem:[#allocation20_spill]] %s1803_s1 }
   0x2   :  { %10 = vsyncpa [#allocation3], 0 }
   0x3   :  { %12 = vsyncpa [#allocation3 + $0x1], 0 }
   0x4   :  { %13 = vsyncpa [#allocation6], 0 }
   0x5   :  { %14 = vsyncpa [#allocation4], 0 }
   0x6   :  { %16 = vsyncpa [#allocation4 + $0x1], 0 }
   0x7   :  { %17 = vsyncpa [#allocation9], 0 }
   0x8   :  { %19 = vsyncpa [#allocation9 + $0x1], 0  ;;  %s1395_s15 = smov 0   ;;  %s1397_s16 = smov 0  }
   0x9   :  { %s1399_s17 = smov 0   ;;  %s1401_s18 = smov 0  }
   0xa   :  { %s1403_s19 = smov 0   ;;  %s1405_s20 = smov 0  }
   0xb   :  { %s1407_s21 = smov 0   ;;  %s1409_s22 = smov 0  }
   0xc LB: > { %1819 = sst [smem:[#allocation15_spill]] %s1330_s15  ;;  %s1436_s23 = sadd.s32 4294967295, %s1358_s22   ;;  %s1358_s22 = sphi %s1409_s22, %s25_s22   ;;  %s1354_s21 = sphi %s1407_s21, %s1850_s21   ;;  %s1350_s20 = sphi %s1405_s20, %s1844_s20   ;;  %s1346_s19 = sphi %s1403_s19, %s1849_s19   ;;  %s1342_s18 = sphi %s1401_s18, %s1843_s18   ;;  %s1338_s17 = sphi %s1399_s17, %s1848_s17   ;;  %s1334_s16 = sphi %s1397_s16, %s1847_s16   ;;  %s1330_s15 = sphi %s1395_s15, %s1846_s15  }
   0xd   : > { %1820 = sst [smem:[#allocation16_spill]] %s1350_s20  ;;  %s1810_s24 = sadd.s32 4294967294, %s1358_s22  }
   0xe   : > { %p68_p0 = scmp.ne.s32.totalorder %s1334_s16, %s1330_s15  ;;  %p1807_p1 = scmp.eq.s32.totalorder %s1436_s23, 0 }
   0xf   : > { %p123_p3 = scmp.eq.s32.totalorder %s1810_s24, 3  ;;  %p859_p5 = scmp.ge.s32.totalorder %s1358_s22, 1 }
  0x10   : > { %p1447_p4 = por %p1807_p1, %p68_p0  ;;  %p186_p7 = scmp.lt.s32.totalorder %s1358_s22, 5 }
  0x11   : > { %p1452_p6 = por %p123_p3, %p68_p0  ;;  %s1360_s28 = smov [#allocation5]  }
  0x12   : > { %s1821_s25 = scalar_select %p1447_p4, 1, 0 }
  0x13   : > { %s1822_s26 = scalar_select %p1452_p6, 1, 0 }
  0x14   : > { %p1457_p8 = pnand %p859_p5, %p186_p7  ;;  %s198_s29 = sshll.u32 %s1360_s28, 4  ;;  %s199_s29 = int_to_ptr.vmem [resolvable:$true] %s198_s29 }
  0x15   : > { %1823 = sst [smem:[#allocation17_spill]] %s1822_s26  ;;  %s1826_s1 = sld [smem:[#allocation20_spill]] }
  0x16   : > { %s1824_s27 = scalar_select %p1457_p8, 1, 0 }
  0x17   : > { %p1035_p9 = pneg %p1457_p8 }
  0x19   : > { %p1465_p10 = pnand %p1035_p9, %p1807_p1 }
  0x1b   : > { %s1138_s7 = scalar_lea.hbm %s1826_s1, 320  ;;  %p1140_p12 = pneg %p1465_p10 }
  0x1c   : > { %p1139_p11 = scmp.ne.s32.totalorder %s1826_s1, %s1138_s7  ;;  %p1145_p3 = scmp.lt.u32.totalorder %s1138_s7, %s1826_s1 }
  0x1e   : > { %p1141_p13 = pnand %p1140_p12, %p1139_p11 }
  0x20   : > { %p1142_p0 = pneg %p1141_p13 }
  0x22   : > { %p1147_p5 = pnand %p1145_p3, %p1142_p0 }
  0x24   : > { %1150 = shalt.err (!%p1147_p5)
}
  0x25   : > { %s1151_s12 = scalar_lea.vmem %s199_s29, 320  ;;  %p1159_p2 = scmp.lt.s32.totalorder %s199_s29, %s199_s29 }
  0x26   : > { %p1152_p7 = scmp.ne.s32.totalorder %s199_s29, %s1151_s12  ;;  %p1160_p6 = scmp.lt.s32.totalorder %s1151_s12, %s1151_s12 }
  0x28   : > { %p1154_p9 = pnand %p1152_p7, %p1140_p12  ;;  %p1161_p4 = por %p1160_p6, %p1159_p2 }
  0x2a   : > { %p1155_p1 = pneg %p1154_p9 }
  0x2c   : > { %p1162_p8 = pnand %p1161_p4, %p1155_p1 }
  0x2e   : > { %1165 = shalt.err (!%p1162_p8)
}
  0x2f   : > { %s1811_s13 = smov 64   ;;  %s1812_s14 = smov 4  }
  0x30   : > { %1038 = dma.hbm_to_vmem [thread:$0]  (!%p1465_p10), %s1826_s1, 320, %s199_s29, [#allocation6], %s1811_s13, %s1811_s13, %s1812_s14  }
  0x31   : > { %s40_s6 = sadd.s32 1, %s1350_s20  ;;  %s44_s7 = sadd.s32 1, %s1354_s21 }
  0x32   : > { %p42_p1 = scmp.ge.s32.totalorder %s40_s6, 2  ;;  %s55_s8 = sadd.s32 1, %s1338_s17 }
  0x33   : > { %p62_p2 = scmp.ne.s32.totalorder %s1338_s17, %s1334_s16  ;;  %p63_p4 = scmp.eq.s32.totalorder %s1358_s22, 0 }
  0x34   : > { %s1852_s6 = smov (%p42_p1, %s40_s6), 0  ;;  %s1854_s7 = smov (!%p42_p1, %s44_s7), %s1354_s21 }
  0x35   : > { %1827 = sst [smem:[#allocation18_spill]] %s1852_s6  ;;  %s51_s30 = ssub.s32 %s1350_s20, %s1852_s6 }
  0x36   : > { %p46_p6 = scmp.ge.s32.totalorder %s1854_s7, 2  ;;  %p1828_p8 = scmp.eq.s32.totalorder %s1436_s23, 3 }
  0x37   : > { %p1505_p10 = por %p63_p4, %p62_p2  ;;  %p1054_p12 = scmp.lt.s32.totalorder %s1358_s22, 4 }
  0x38   : > { %p1501_p11 = por %p1828_p8, %p62_p2  ;;  %s1856_s7 = smov (%p46_p6, %s1854_s7), 0 }
  0x39   : > { %1831 = sst [smem:[#allocation19_spill]] %s1856_s7  ;;  %s212_s10 = sand.u32 1, %s1338_s17  }
  0x3a   : > { %s917_s11 = sshll.u32 %s1350_s20, 4  ;;  %s50_s12 = ssub.s32 %s1354_s21, %s1856_s7 }
  0x3b   : > { %s52_s28 = sor.u32 %s51_s30, %s50_s12  ;;  %s862_s5 = sshll.u32 %s212_s10, 6 }
  0x3c   : > { %p53_p13 = scmp.eq.s32.totalorder %s52_s28, 0  ;;  %s865_s24 = sshll.u32 %s1354_s21, 5 }
  0x3d   : > { %s216_s13 = scalar_lea.vmem [#allocation2], %s862_s5  ;;  %s224_s6 = sadd.s32 %s917_s11, %s865_s24 }
  0x3e   : > { %s227_s14 = sshll.u32 %s216_s13, 4  ;;  %s866_s26 = sshll.u32 %s224_s6, 6  ;;  %s1520_s14 = int_to_ptr.vmem [resolvable:$true] %s227_s14 }
  0x3f   : > { %s1518_s1 = scalar_select %p53_p13, %s1338_s17, %s55_s8  }
  0x40   : > { %p1526_p0 = pnand %p1054_p12, %p1505_p10  ;;  %s1533_s30 = scalar_lea.hbm %s1802_s0, %s866_s26 }
  0x41   : > { %s1535_s24 = scalar_lea.sflag [#allocation3], %s212_s10  ;;  %s1166_s13 = scalar_lea.hbm %s1533_s30, 1024 }
  0x42   : > { %p1167_p3 = scmp.ne.s32.totalorder %s1533_s30, %s1166_s13  ;;  %p1168_p5 = pneg %p1526_p0 }
  0x43   : > { %s1171_s7 = scalar_lea.hbm %s1802_s0, 4096  ;;  %p1172_p1 = scmp.lt.u32.totalorder %s1533_s30, %s1802_s0 }
  0x44   : > { %p1169_p7 = pnand %p1168_p5, %p1167_p3  ;;  %p1173_p2 = scmp.lt.u32.totalorder %s1171_s7, %s1166_s13 }
  0x45   : > { %p1175_p6 = scmp.lt.u32.totalorder %s1166_s13, %s1533_s30 }
  0x46   : > { %p1170_p9 = pneg %p1169_p7  ;;  %p1174_p4 = por %p1173_p2, %p1172_p1 }
  0x48   : > { %p1176_p8 = por %p1175_p6, %p1174_p4 }
  0x4a   : > { %p1177_p10 = pnand %p1176_p8, %p1170_p9 }
  0x4c   : > { %1180 = shalt.err (!%p1177_p10)
}
  0x4d   : > { %s1181_s29 = scalar_lea.vmem %s1520_s14, 1024  ;;  %s1363_s10 = smov [#allocation2]  }
  0x4e   : > { %p1182_p12 = scmp.ne.s32.totalorder %s1520_s14, %s1181_s29  ;;  %s1186_s11 = sshll.u32 %s1363_s10, 4  ;;  %s1187_s11 = int_to_ptr.vmem [resolvable:$false] %s1186_s11 }
  0x4f   : > { %s1188_s12 = scalar_lea.vmem %s1187_s11, 2048  ;;  %p1189_p7 = scmp.lt.s32.totalorder %s1520_s14, %s1187_s11 }
  0x50   : > { %p1184_p13 = pnand %p1182_p12, %p1168_p5  ;;  %p1190_p1 = scmp.lt.s32.totalorder %s1188_s12, %s1181_s29 }
  0x52   : > { %p1185_p3 = pneg %p1184_p13  ;;  %p1191_p2 = por %p1190_p1, %p1189_p7 }
  0x54   : > { %p1192_p4 = pnand %p1191_p2, %p1185_p3 }
  0x56   : > { %1195 = shalt.err (!%p1192_p4)
}
  0x57   : > { %s1833_s28 = smov 4   ;;  %s1834_s5 = smov 64  }
  0x58   : > { %1042 = dma.hbm_to_vmem [thread:$0]  (!%p1526_p0), %s1533_s30, 1024, %s1520_s14, %s1535_s24, %s1834_s5, %s1834_s5, %s1833_s28  }
  0x59   : > { %p1835_p5 = scmp.ne.s32.totalorder %s1824_s27, 0 }
  0x5a   : > { %s1569_s13 = sand.u32 (!%p1835_p5), 1, %s1334_s16   ;;  %p1836_p9 = scmp.ne.s32.totalorder (!%p1835_p5), %s1821_s25, 0 }
  0x5b   : > { %239 = sbr.rel (%p1835_p5) target bundleno = 421 (0x1a5), region = 28  ;;  %s868_s6 = sshll.u32 (!%p1835_p5), %s1569_s13, 6 }
  0x5c   : > { %s242_s20 = scalar_lea.sflag (!%p1835_p5), [#allocation3], %s1569_s13  ;;  %s1575_s15 = scalar_lea.vmem (!%p1835_p5), [#allocation2], %s868_s6 }
  0x62   : > { %1313 = dma.done.wait (%p1836_p9), %s242_s20, 1024  }
  0x63   : > { %1315 = vsyncadd (%p1836_p9), %s242_s20, 4294966272  ;;  %p1837_p0 = scmp.eq.s32.totalorder %s1436_s23, 0 }
  0x65   : > { %1317 = dma.done.wait (%p1837_p0), [#allocation6], 320   ;;  %p1838_p6 = pmov %p1837_p0 }
  0x66   : > { %v1127_v0 = vld [vmem:[#allocation5] sm:$0xff]   ;;  %v1128_v1 = vld [vmem:[#allocation5 + $0x8] sm:$0xff]   ;;  %vm369_vm0 = vcmask 293888   ;;  %v1129_v2 = vld [vmem:[#allocation5 + $0x10] ss:$0 sps:$4 sm:$0x33]  }
  0x67   : > { %1319 = vsyncadd (%p1838_p6), [#allocation6], 4294966976  ;;  %993 = vmatprep.subr.bf16.mxu0 %v1127_v0  ;;  %v1130_v3 = vld [vmem:[%s1575_s15] sm:$0xff]   ;;  %1015 = vmatprep.subr.bf16.mxu1 %v1127_v0  ;;  %vm394_vm1 = vcmask 1041408   ;;  %v1131_v6 = vld [vmem:[%s1575_s15 + $0x8] sm:$0xff]   ;;  %s1602_s25 = scalar_lea.vmem [#allocation8], %s1569_s13 }
  0x68   : > { %994 = vmatpush3.bf16.msra.mxu0 %v1127_v0  ;;  %1018 = vmatpush3.bf16.msra.mxu1 %v1127_v0  ;;  %v1134_v4 = vld [vmem:[%s1575_s15 + $0x20] sm:$0xff]   ;;  %v396_v5 = vsel %vm394_vm1, %v1129_v2, 0  ;;  %v1135_v7 = vld [vmem:[%s1575_s15 + $0x28] sm:$0xff]   ;;  %v1132_v8 = vld [vmem:[%s1575_s15 + $0x10] sm:$0xff]   ;;  %v1364_v12 = vmov 0.0   ;;  %s1606_s27 = scalar_lea.vmem [#allocation10], %s1569_s13 }
  0x69   : > { %995 = vmatprep.subr.bf16.mxu0 %v1128_v1  ;;  %999 = vmatprep.mubr.msk.bf16.mxu0 %vm369_vm0, %v1130_v3  ;;  %v1136_v9 = vld [vmem:[%s1575_s15 + $0x30] sm:$0xff]   ;;  %v1133_v10 = vld [vmem:[%s1575_s15 + $0x18] sm:$0xff]   ;;  %291 = vst [vmem:[%s1602_s25] sm:$0x1] %v1364_v12  ;;  %292 = vst [vmem:[%s1606_s27] sm:$0x1] %v1364_v12  ;;  %s934_s14 = sshll.u32 %s1342_s18, 4  ;;  %s909_s30 = sshll.u32 %s1346_s19, 5 }
  0x6a   : > { %1016 = vmatprep.subr.bf16.mxu1 %v1128_v1  ;;  %1007 = vmatprep.mubr.msk.bf16.mxu1 %vm369_vm0, %v1134_v4  ;;  %v1137_v11 = vld [vmem:[%s1575_s15 + $0x38] sm:$0xff]   ;;  %s1625_s24 = scalar_lea.vmem [#allocation7], %s868_s6  ;;  %s662_s7 = sadd.s32 %s934_s14, %s909_s30 }
  0x6b   : > { %s665_s26 = sshll.u32 %s1625_s24, 4  ;;  %s910_s8 = sshll.u32 %s662_s7, 6  ;;  %s1642_s26 = int_to_ptr.vmem [resolvable:$true] %s665_s26 }
  0x6c   : > { %996 = vmatpush3.bf16.msra.mxu0 %v1128_v1  ;;  %1019 = vmatpush3.bf16.msra.mxu1 %v1128_v1  ;;  %s1651_s11 = scalar_lea.hbm %s1804_s2, %s910_s8  ;;  %s640_s12 = scalar_lea.sflag [#allocation4], %s1569_s13 }
  0x6d   : > { %1021 = vmatprep.subr.msk.bf16.mxu0 %vm394_vm1, %v1129_v2  ;;  %1022 = vmatprep.subr.msk.bf16.mxu1 %vm394_vm1, %v1129_v2  ;;  %s1196_s28 = scalar_lea.vmem %s1642_s26, 1024  ;;  %s1365_s5 = smov [#allocation7]  }
  0x6e   : > { %p1197_p8 = scmp.ne.s32.totalorder %s1642_s26, %s1196_s28  ;;  %s1200_s6 = sshll.u32 %s1365_s5, 4  ;;  %s1201_s6 = int_to_ptr.vmem [resolvable:$false] %s1200_s6 }
  0x6f   : > { %s1202_s20 = scalar_lea.vmem %s1201_s6, 2048  ;;  %p1203_p13 = scmp.lt.s32.totalorder %s1642_s26, %s1201_s6 }
  0x70   : > { %998 = vmatpush3.bf16.msra.mxu0 %v396_v5  ;;  %1020 = vmatpush3.bf16.msra.mxu1 %v396_v5  ;;  %p1198_p10 = pnand %p1197_p8, %p1501_p11  ;;  %p1204_p3 = scmp.lt.s32.totalorder %s1202_s20, %s1196_s28 }
  0x72   : > { %p1199_p12 = pneg %p1198_p10  ;;  %p1205_p7 = por %p1204_p3, %p1203_p13 }
  0x73   : > { %1000 = vmatmul.mubr.msk.bf16.vlgmr.msra.gmra.mrb[0].mxu0 %vm369_vm0, %v1131_v6  ;;  %1008 = vmatmul.mubr.msk.bf16.vlgmr.msra.gmra.mrb[0].mxu1 %vm369_vm0, %v1135_v7 }
  0x74   : > { %1003 = vmatprep.mubr.msk.bf16.mxu0 %vm369_vm0, %v1132_v8  ;;  %1011 = vmatprep.mubr.msk.bf16.mxu1 %vm369_vm0, %v1136_v9  ;;  %p1206_p1 = pnand %p1205_p7, %p1199_p12 }
  0x7b   : > { %1004 = vmatmul.mubr.msk.bf16.gmra.mrb[4].mxu0 %vm369_vm0, %v1133_v10  ;;  %1012 = vmatmul.mubr.msk.bf16.gmra.mrb[4].mxu1 %vm369_vm0, %v1137_v11 }
 0x146   : > { %v1001_v13 = vpop.f32.mrb[0].mxu0  ;;  %v1609_v14 = vpop.f32.mrb[0].mxu1 }
 0x147   : > { %v432_v15 = vpop.f32.mrb[1].mxu0  ;;  %v1611_v16 = vpop.f32.mrb[1].mxu1  ;;  %v602_v28 = vmul.f32 %v1001_v13, %v1001_v13 }
 0x148   : > { %v1002_v17 = vpop.f32.mrb[2].mxu0  ;;  %v1613_v18 = vpop.f32.mrb[2].mxu1  ;;  %v600_v19 = vmul.f32 %v432_v15, %v432_v15  ;;  %v608_v58 = vmul.f32 %v1611_v16, %v1611_v16 }
 0x149   : > { %v943_v20 = vpack.c.bf16 %v1002_v17, %v1001_v13  ;;  %v435_v21 = vpop.f32.mrb[3].mxu0  ;;  %v963_v22 = vpack.c.bf16 %v1613_v18, %v1609_v14  ;;  %v1617_v23 = vpop.f32.mrb[3].mxu1  ;;  %v603_v31 = vmul.f32 %v1002_v17, %v1002_v17 }
 0x14a   : > { %v938_v24 = vpack.c.bf16 %v435_v21, %v432_v15  ;;  %v576_v25 = vadd.f32 %v435_v21, %v432_v15  ;;  %v601_v26 = vmul.f32 %v435_v21, %v435_v21  ;;  %v958_v27 = vpack.c.bf16 %v1617_v23, %v1611_v16 }
 0x14b   : > { %975 = vst [vmem:[%s1625_s24 + $0x8] sm:$0xff] %v943_v20   ;;  %979 = vst [vmem:[%s1625_s24 + $0x28] sm:$0xff] %v963_v22  }
 0x14c   : > { %939 = vst [vmem:[%s1625_s24] sm:$0xff] %v938_v24   ;;  %v577_v29 = vadd.f32 %v1001_v13, %v576_v25  ;;  %v616_v30 = vadd.f32 %v601_v26, %v600_v19  ;;  %978 = vst [vmem:[%s1625_s24 + $0x20] sm:$0xff] %v958_v27  }
 0x14e   : > { %v617_v32 = vadd.f32 %v616_v30, %v602_v28  ;;  %v1005_v33 = vpop.f32.mrb[4].mxu0  ;;  %v578_v34 = vadd.f32 %v1002_v17, %v577_v29  ;;  %v1631_v35 = vpop.f32.mrb[4].mxu1 }
 0x14f   : > { %v448_v36 = vpop.f32.mrb[5].mxu0  ;;  %v1634_v37 = vpop.f32.mrb[5].mxu1  ;;  %v606_v52 = vmul.f32 %v1005_v33, %v1005_v33 }
 0x150   : > { %v579_v38 = vadd.f32 %v578_v34, %v448_v36  ;;  %v604_v39 = vmul.f32 %v448_v36, %v448_v36  ;;  %v618_v40 = vadd.f32 %v617_v32, %v603_v31  ;;  %v1006_v41 = vpop.f32.mrb[6].mxu0  ;;  %v1636_v42 = vpop.f32.mrb[6].mxu1 }
 0x151   : > { %v953_v43 = vpack.c.bf16 %v1006_v41, %v1005_v33  ;;  %v451_v44 = vpop.f32.mrb[7].mxu0  ;;  %v973_v45 = vpack.c.bf16 %v1636_v42, %v1631_v35  ;;  %v1640_v46 = vpop.f32.mrb[7].mxu1  ;;  %v607_v55 = vmul.f32 %v1006_v41, %v1006_v41 }
 0x152   : > { %v619_v47 = vadd.f32 %v618_v40, %v604_v39  ;;  %v948_v48 = vpack.c.bf16 %v451_v44, %v448_v36  ;;  %v580_v49 = vadd.f32 %v579_v38, %v451_v44  ;;  %v605_v50 = vmul.f32 %v451_v44, %v451_v44 }
 0x153   : > { %977 = vst [vmem:[%s1625_s24 + $0x18] sm:$0xff] %v953_v43   ;;  %981 = vst [vmem:[%s1625_s24 + $0x38] sm:$0xff] %v973_v45   ;;  %v968_v51 = vpack.c.bf16 %v1640_v46, %v1634_v37 }
 0x154   : > { %976 = vst [vmem:[%s1625_s24 + $0x10] sm:$0xff] %v948_v48   ;;  %v581_v53 = vadd.f32 %v1005_v33, %v580_v49  ;;  %v620_v54 = vadd.f32 %v619_v47, %v605_v50 }
 0x155   : > { %980 = vst [vmem:[%s1625_s24 + $0x30] sm:$0xff] %v968_v51  }
 0x156   : > { %v621_v56 = vadd.f32 %v620_v54, %v606_v52  ;;  %v582_v57 = vadd.f32 %v1006_v41, %v581_v53 }
 0x157   : > { %1209 = shalt.err (!%p1206_p1)
}
 0x158   : > { %s1210_s15 = scalar_lea.hbm %s1651_s11, 1024  ;;  %s1214_s24 = scalar_lea.hbm %s1804_s2, 4096 }
 0x159   : > { %p1211_p2 = scmp.ne.s32.totalorder %s1651_s11, %s1210_s15  ;;  %p1215_p9 = scmp.lt.u32.totalorder %s1651_s11, %s1804_s2 }
 0x15a   : > { %p1216_p0 = scmp.lt.u32.totalorder %s1214_s24, %s1210_s15  ;;  %p1218_p8 = scmp.lt.u32.totalorder %s1210_s15, %s1651_s11 }
 0x15b   : > { %p1212_p4 = pnand %p1211_p2, %p1501_p11 }
 0x15c   : > { %p1217_p6 = por %p1216_p0, %p1215_p9 }
 0x15d   : > { %p1213_p5 = pneg %p1212_p4 }
 0x15e   : > { %p1219_p10 = por %p1218_p8, %p1217_p6 }
 0x160   : > { %p1220_p12 = pnand %p1219_p10, %p1213_p5 }
 0x162   : > { %1223 = shalt.err (!%p1220_p12)
}
 0x163   : > { %s1366_s29 = smov 64   ;;  %s1367_s10 = smov 4   ;;  %v583_v59 = vadd.f32 %v582_v57, %v1611_v16  ;;  %v622_v60 = vadd.f32 %v621_v56, %v607_v55  ;;  %v609_v63 = vmul.f32 %v1617_v23, %v1617_v23  ;;  %v610_v0 = vmul.f32 %v1609_v14, %v1609_v14  ;;  %v575_v28 = vld [vmem:[%s1602_s25] sm:$0x1] }
 0x164   : > { %1029 = dma.vmem_to_hbm [thread:$0]  (%p1501_p11), %s1642_s26, 1024, %s1651_s11, %s640_s12, %s1366_s29, %s1366_s29, %s1367_s10   ;;  %v611_v3 = vmul.f32 %v1613_v18, %v1613_v18  ;;  %v612_v6 = vmul.f32 %v1634_v37, %v1634_v37  ;;  %v613_v11 = vmul.f32 %v1640_v46, %v1640_v46  ;;  %v614_v12 = vmul.f32 %v1631_v35, %v1631_v35 }
 0x165   : > { %v623_v61 = vadd.f32 %v622_v60, %v608_v58  ;;  %v584_v62 = vadd.f32 %v583_v59, %v1617_v23  ;;  %v615_v15 = vmul.f32 %v1636_v42, %v1636_v42  ;;  %s911_s13 = sshll.u32 %s1346_s19, 1  ;;  %s644_s11 = sand.u32 1, %s1436_s23   ;;  %v599_v31 = vld [vmem:[%s1606_s27] sm:$0x1] }
 0x166   : > { %s679_s26 = sadd.s32 %s1342_s18, %s911_s13  ;;  %s683_s28 = sshll.u32 %s1602_s25, 4  ;;  %s1715_s28 = int_to_ptr.vmem [resolvable:$true] %s683_s28 }
 0x167   : > { %v585_v1 = vadd.f32 %v1609_v14, %v584_v62  ;;  %v624_v2 = vadd.f32 %v623_v61, %v609_v63  ;;  %s912_s12 = sshll.u32 %s679_s26, 4  ;;  %s698_s5 = sshll.u32 %s1606_s27, 4  ;;  %s1723_s5 = int_to_ptr.vmem [resolvable:$true] %s698_s5 }
 0x168   : > { %s1713_s20 = scalar_lea.hbm %s1805_s3, %s912_s12  ;;  %s1721_s15 = scalar_lea.hbm %s1806_s4, %s912_s12 }
 0x169   : > { %v625_v4 = vadd.f32 %v624_v2, %v610_v0  ;;  %v586_v5 = vadd.f32 %v1613_v18, %v585_v1  ;;  %s1725_s14 = scalar_lea.sflag [#allocation9], %s644_s11  ;;  %s1224_s30 = scalar_lea.vmem %s1715_s28, 16 }
 0x16a   : > { %p1225_p13 = scmp.ne.s32.totalorder %s1715_s28, %s1224_s30  ;;  %s1368_s24 = smov [#allocation8]  }
 0x16b   : > { %v587_v7 = vadd.f32 %v586_v5, %v1634_v37  ;;  %v626_v8 = vadd.f32 %v625_v4, %v611_v3  ;;  %s1228_s7 = sshll.u32 %s1368_s24, 4  ;;  %s1229_s7 = int_to_ptr.vmem [resolvable:$false] %s1228_s7 }
 0x16c   : > { %p1226_p3 = pnand %p1225_p13, %p1501_p11  ;;  %s1230_s8 = scalar_lea.vmem %s1229_s7, 32 }
 0x16d   : > { %v627_v9 = vadd.f32 %v626_v8, %v612_v6  ;;  %v588_v10 = vadd.f32 %v587_v7, %v1640_v46  ;;  %p1231_p1 = scmp.lt.s32.totalorder %s1715_s28, %s1229_s7  ;;  %p1232_p2 = scmp.lt.s32.totalorder %s1230_s8, %s1224_s30 }
 0x16e   : > { %p1227_p7 = pneg %p1226_p3 }
 0x16f   : > { %v589_v13 = vadd.f32 %v1631_v35, %v588_v10  ;;  %v628_v14 = vadd.f32 %v627_v9, %v613_v11  ;;  %p1233_p4 = por %p1232_p2, %p1231_p1 }
 0x171   : > { %v590_v16 = vadd.f32 %v1636_v42, %v589_v13  ;;  %v629_v17 = vadd.f32 %v628_v14, %v614_v12  ;;  %p1234_p5 = pnand %p1233_p4, %p1227_p7 }
 0x173   : > { %v591_v18 = vrot.slane %v590_v16, 4  ;;  %v630_v19 = vadd.f32 %v629_v17, %v615_v15 }
 0x175   : > { %v592_v20 = vadd.f32 %v591_v18, %v590_v16  ;;  %v631_v21 = vrot.slane %v630_v19, 4 }
 0x177   : > { %v593_v22 = vrot.slane %v592_v20, 2  ;;  %v632_v23 = vadd.f32 %v631_v21, %v630_v19 }
 0x179   : > { %v594_v24 = vadd.f32 %v593_v22, %v592_v20  ;;  %v633_v25 = vrot.slane %v632_v23, 2 }
 0x17b   : > { %v595_v26 = vrot.slane %v594_v24, 1  ;;  %v634_v27 = vadd.f32 %v633_v25, %v632_v23 }
 0x17d   : > { %v596_v29 = vadd.f32 %v595_v26, %v594_v24  ;;  %v635_v30 = vrot.slane %v634_v27, 1 }
 0x17f   : > { %v636_v32 = vadd.f32 %v635_v30, %v634_v27  ;;  %v597_v33 = vadd.f32 %v596_v29, %v575_v28 }
 0x181   : > { %598 = vst [vmem:[%s1602_s25] sm:$0x1] %v597_v33  ;;  %v637_v34 = vadd.f32 %v636_v32, %v599_v31 }
 0x182   : > { %1237 = shalt.err (!%p1234_p5)
}
 0x183   : > { %s1238_s25 = scalar_lea.hbm %s1713_s20, 16  ;;  %s1242_s13 = scalar_lea.hbm %s1805_s3, 64 }
 0x184   : > { %p1239_p9 = scmp.ne.s32.totalorder %s1713_s20, %s1238_s25  ;;  %p1243_p8 = scmp.lt.u32.totalorder %s1713_s20, %s1805_s3 }
 0x185   : > { %p1244_p10 = scmp.lt.u32.totalorder %s1242_s13, %s1238_s25  ;;  %p1246_p13 = scmp.lt.u32.totalorder %s1238_s25, %s1713_s20 }
 0x186   : > { %p1240_p0 = pnand %p1239_p9, %p1501_p11 }
 0x187   : > { %p1245_p12 = por %p1244_p10, %p1243_p8 }
 0x188   : > { %p1241_p6 = pneg %p1240_p0 }
 0x189   : > { %p1247_p3 = por %p1246_p13, %p1245_p12 }
 0x18b   : > { %p1248_p7 = pnand %p1247_p3, %p1241_p6 }
 0x18d   : > { %1251 = shalt.err (!%p1248_p7)
}
 0x18e   : > { %1030 = dma.vmem_to_hbm [thread:$0]  (%p1501_p11), %s1715_s28, 16, %s1713_s20, %s1725_s14   ;;  %638 = vst [vmem:[%s1606_s27] sm:$0x1] %v637_v34 }
 0x18f   : > { %s1252_s12 = scalar_lea.vmem %s1723_s5, 16  ;;  %s1369_s19 = smov [#allocation10]  }
 0x190   : > { %p1253_p1 = scmp.ne.s32.totalorder %s1723_s5, %s1252_s12  ;;  %s1256_s6 = sshll.u32 %s1369_s19, 4  ;;  %s1257_s6 = int_to_ptr.vmem [resolvable:$false] %s1256_s6 }
 0x191   : > { %s1258_s18 = scalar_lea.vmem %s1257_s6, 32  ;;  %p1259_p5 = scmp.lt.s32.totalorder %s1723_s5, %s1257_s6 }
 0x192   : > { %p1254_p2 = pnand %p1253_p1, %p1501_p11  ;;  %p1260_p9 = scmp.lt.s32.totalorder %s1258_s18, %s1252_s12 }
 0x194   : > { %p1255_p4 = pneg %p1254_p2  ;;  %p1261_p0 = por %p1260_p9, %p1259_p5 }
 0x196   : > { %p1262_p6 = pnand %p1261_p0, %p1255_p4 }
 0x198   : > { %1265 = shalt.err (!%p1262_p6)
}
 0x199   : > { %s1266_s27 = scalar_lea.hbm %s1721_s15, 16  ;;  %s1270_s23 = scalar_lea.hbm %s1806_s4, 64 }
 0x19a   : > { %p1267_p8 = scmp.ne.s32.totalorder %s1721_s15, %s1266_s27  ;;  %p1271_p13 = scmp.lt.u32.totalorder %s1721_s15, %s1806_s4 }
 0x19b   : > { %p1272_p3 = scmp.lt.u32.totalorder %s1270_s23, %s1266_s27  ;;  %p1274_p1 = scmp.lt.u32.totalorder %s1266_s27, %s1721_s15 }
 0x19c   : > { %p1268_p10 = pnand %p1267_p8, %p1501_p11 }
 0x19d   : > { %p1273_p7 = por %p1272_p3, %p1271_p13 }
 0x19e   : > { %p1269_p12 = pneg %p1268_p10 }
 0x19f   : > { %p1275_p2 = por %p1274_p1, %p1273_p7 }
 0x1a1   : > { %p1276_p4 = pnand %p1275_p2, %p1269_p12 }
 0x1a3   : > { %1279 = shalt.err (!%p1276_p4)
}
 0x1a4   : > { %1031 = dma.vmem_to_hbm [thread:$0]  (%p1501_p11), %s1723_s5, 16, %s1721_s15, %s1725_s14  }
 0x1a5 PF: > { %s1839_s7 = sld [smem:[#allocation15_spill]]  ;;  %s1840_s8 = sld [smem:[#allocation17_spill]] }
 0x1a6   : > { %p1056_p5 = scmp.ge.s32.totalorder %s1358_s22, 2 }
 0x1ab   : > { %s710_s25 = sand.u32 1, %s1839_s7   ;;  %p1841_p9 = scmp.ne.s32.totalorder %s1840_s8, 0 }
 0x1ac   : > { %s711_s29 = scalar_lea.sflag [#allocation4], %s710_s25 }
 0x1ad   : > { %p1044_p0 = pnand %p1056_p5, %p1841_p9 }
 0x1af   : > { %1321 = dma.done.wait (!%p1044_p0), %s711_s29, 1024  }
 0x1b0   : > { %1323 = vsyncadd (!%p1044_p0), %s711_s29, 4294966272  ;;  %s1842_s10 = sadd.s32 4294967294, %s1358_s22  }
 0x1b1   : > { %s719_s13 = sand.u32 1, %s1842_s10  }
 0x1b2   : > { %s720_s26 = scalar_lea.sflag [#allocation9], %s719_s13 }
 0x1b3   : > { %1325 = dma.done.wait (!%p1044_p0), %s720_s26, 32  }
 0x1b4   : > { %1327 = vsyncadd (!%p1044_p0), %s720_s26, 4294967264  ;;  %s25_s22 = sadd.s32 1, %s1358_s22   ;;  %s1843_s18 = sld [smem:[#allocation16_spill]] }
 0x1b5   : > { %p22_p11 = scmp.ge.s32.totalorder %s25_s22, 6   ;;  %s1844_s20 = sld [smem:[#allocation18_spill]] }
 0x1b6   : > { %s1845_s9 = sld [smem:[#allocation19_spill]]  ;;  %s1846_s15 = smov %s1334_s16 }
 0x1b7   : > { %s1847_s16 = smov %s1338_s17  ;;  %s1848_s17 = smov %s1518_s1 }
 0x1b8   : > { %s1849_s19 = smov %s1354_s21  ;;  %24 = sbr.rel (!%p22_p11) target bundleno = 12 (0xc), region = 113 }
 0x1bc   : > { %s1850_s21 = smov %s1845_s9 }
 0x1bf   :  { %732 = vsyncpa [#allocation3], 1 }
 0x1c0   :  { %734 = vsyncpa [#allocation3 + $0x1], 1 }
 0x1c1   :  { %735 = vsyncpa [#allocation6], 1 }
 0x1c2   :  { %736 = vsyncpa [#allocation4], 1 }
 0x1c3   :  { %738 = vsyncpa [#allocation4 + $0x1], 1 }
 0x1c4   :  { %739 = vsyncpa [#allocation9], 1 }
 0x1c5   :  { %741 = vsyncpa [#allocation9 + $0x1], 1 }

</bundles_post_ra>
